<compile_context>
chip_gen: v7x
topology: tpu7x:2x2x1
jax: 0.10.0
libtpu: 0.0.40
codegen_flags: <defaults>
</compile_context>

<pallas_src>
import functools

import jax
import jax.numpy as jnp
from jax import lax
from jax.experimental import pallas as pl
from jax.experimental.pallas import tpu as pltpu


def _stats_kernel(x_ref, w_ref, g_ref, b_ref, scale_ref, shift_ref, *,
                  red_axis, n_rows, tm, inv_n, eps, mask_rows):
    """Accumulate per-channel sum / sum-of-squares of y = x @ W^T; at the last
    reduction step fold gamma/beta/mean/rstd into the final BN scale/shift."""
    r = pl.program_id(red_axis)            # row-tile index (reduction axis)
    nr = pl.num_programs(red_axis)

    @pl.when(r == 0)
    def _init():
        scale_ref[...] = jnp.zeros_like(scale_ref)   # running sum(y)
        shift_ref[...] = jnp.zeros_like(shift_ref)   # running sum(y*y)

    # Native [Cout, Cin] weight layout: contract dim 1 of x with dim 1 of W.
    y = lax.dot_general(x_ref[...], w_ref[...],
                        dimension_numbers=(((1,), (1,)), ((), ())),
                        preferred_element_type=jnp.float32)
    if mask_rows:
        # N % tm != 0: rows past the end of x in the boundary tile are
        # unspecified; zero them so they contribute nothing to the stats.
        rows_left = n_rows - r * tm
        ridx = lax.broadcasted_iota(jnp.int32, y.shape, 0)
        y = jnp.where(ridx < rows_left, y, 0.0)

    scale_ref[...] += jnp.sum(y, axis=0, keepdims=True)
    shift_ref[...] += jnp.sum(y * y, axis=0, keepdims=True)

    @pl.when(r == nr - 1)
    def _finalize():
        mean = scale_ref[...] * inv_n
        # Single-sweep biased variance E[y^2] - mean^2 (clamped at 0); mild
        # f32 cancellation is possible when |mean| >> std.
        var = jnp.maximum(shift_ref[...] * inv_n - mean * mean, 0.0)
        rstd = lax.rsqrt(var + eps)
        sc = g_ref[...] * rstd
        scale_ref[...] = sc
        shift_ref[...] = b_ref[...] - mean * sc


def _norm_kernel(x_ref, w_ref, scale_ref, shift_ref, o_ref):
    # Recompute the (cheap) matmul for this tile, then one fused FMA pass.
    # TODO(synk): for strongly compute-bound shapes (very large Cin) a variant
    # that stores pre-BN y in phase 1 and only does the FMA here would halve
    # MXU work; recompute wins for memory-bound shapes.
    y = lax.dot_general(x_ref[...], w_ref[...],
                        dimension_numbers=(((1,), (1,)), ((), ())),
                        preferred_element_type=jnp.float32)
    o_ref[...] = (y * scale_ref[...] + shift_ref[...]).astype(o_ref.dtype)


def linear_bn(x, weight, bias, gamma, beta, *, eps=1e-5):
    """Forward of Linear -> BatchNorm1d with training-mode batch statistics.

    x: [T, B, Cin] or [B, Cin]; weight: [Cout, Cin]; bias/gamma/beta: [Cout].
    `bias` is accepted for API parity but is a mathematical no-op here: the
    batch-mean subtraction removes it exactly from the normalized output.
    """
    del bias
    orig_shape = x.shape
    x2 = x.reshape(-1, x.shape[-1])          # free reshape: [N, Cin]
    N, Cin = x2.shape
    Cout = weight.shape[0]
    in_dtype = x2.dtype
    out_dtype = x2.dtype
    ib = jnp.dtype(in_dtype).itemsize
    ob = jnp.dtype(out_dtype).itemsize
    f32 = jnp.float32

    # ---- generation-aware VMEM budget (64 MiB v7x, 128 MiB v5e/v6e) --------
    try:
        vmem_cap = int(pltpu.get_tpu_info().vmem_capacity_bytes)
        if vmem_cap <= 0:
            raise ValueError("bad vmem capacity")
    except Exception:
        vmem_cap = 64 * 1024 * 1024          # conservative (v7x) default
    vmem_limit = max(32 * 1024 * 1024,
                     min((vmem_cap * 3) // 4, 112 * 1024 * 1024))
    budget = (vmem_limit * 4) // 5           # headroom for Mosaic internals

    # ---- channel tiling: keep the weight VMEM-resident whenever it fits ----
    cp128 = pl.cdiv(Cout, 128) * 128
    if 2 * Cin * cp128 * ib <= budget // 2:   # double-buffer cushion for W
        tn, ct, Cp = Cout, 1, Cout            # no channel padding, no slicing
        wmat = weight.astype(in_dtype)        # native [Cout, Cin] layout
        g2 = gamma.astype(f32).reshape(1, Cout)
        b2 = beta.astype(f32).reshape(1, Cout)
    else:
        # Huge-weight fallback: 256/128-wide channel tiles, W streamed.
        tn = 256 if cp128 % 256 == 0 else 128
        Cp, ct = cp128, cp128 // tn
        wmat = weight.astype(in_dtype)
        if Cp != Cout:
            wmat = jnp.zeros((Cp, Cin), in_dtype).at[:Cout].set(wmat)
        g2 = jnp.zeros((1, Cp), f32).at[:, :Cout].set(gamma.astype(f32))
        b2 = jnp.zeros((1, Cp), f32).at[:, :Cout].set(beta.astype(f32))
        # Padded channels: zero W rows -> zero stats -> scale = shift = 0.

    # ---- row tiling from the VMEM budget ------------------------------------
    sub = max(8, 32 // ib)                   # sublane pack: 8 f32 / 16 bf16 / 32 i8
    fixed = 2 * tn * Cin * ib + 8 * Cp * 4 + (1 << 20)       # W bufs + params
    per_row = 2 * Cin * ib + 2 * tn * ob + 3 * tn * 4        # x, out, f32 temps
    tm = max(sub, min((budget - fixed) // per_row, 2048))
    tm = (tm // 256) * 256 if tm >= 512 else (tm // sub) * sub
    tm = min(tm, pl.cdiv(N, sub) * sub)      # never larger than (rounded) N
    nt = pl.cdiv(N, tm)
    mask_rows = (N % tm) != 0                # partial last row tile -> mask it

    # ---- phase 1: per-channel BN scale/shift over all N rows ---------------
    # Resident-W path: rows are the only real loop -> x streamed once, W
    # fetched once, accumulators resident.  Fallback (W too big): channels
    # outer / rows inner (reduction last, static indexing, provably correct);
    # W is still read once, x is re-streamed per channel tile.
    if ct == 1:
        grid1, red_axis = (nt, 1), 0
        x_map1 = lambda n, j: (n, 0)
        w_map1 = lambda n, j: (0, 0)
        p_map1 = lambda n, j: (0, 0)
        sem1 = ("arbitrary", "arbitrary")
    else:
        grid1, red_axis = (ct, nt), 1
        x_map1 = lambda j, n: (n, 0)
        w_map1 = lambda j, n: (j, 0)
        p_map1 = lambda j, n: (0, j)
        sem1 = ("parallel", "arbitrary")
    p_blk = Cp if ct == 1 else tn

    scale, shift = pl.pallas_call(
        functools.partial(_stats_kernel, red_axis=red_axis, n_rows=N, tm=tm,
                          inv_n=1.0 / N, eps=float(eps), mask_rows=mask_rows),
        out_shape=(jax.ShapeDtypeStruct((1, Cp), f32),
                   jax.ShapeDtypeStruct((1, Cp), f32)),
        grid_spec=pltpu.PrefetchScalarGridSpec(
            num_scalar_prefetch=0, grid=grid1,
            in_specs=[pl.BlockSpec((tm, Cin), x_map1),
                      pl.BlockSpec((tn, Cin), w_map1),
                      pl.BlockSpec((1, p_blk), p_map1),
                      pl.BlockSpec((1, p_blk), p_map1)],
            out_specs=(pl.BlockSpec((1, p_blk), p_map1),
                       pl.BlockSpec((1, p_blk), p_map1)),
        ),
        compiler_params=pltpu.CompilerParams(
            dimension_semantics=sem1, vmem_limit_bytes=vmem_limit),
    )(x2, wmat, g2, b2)

    # ---- phase 2: recompute matmul per tile and apply fused scale/shift ----
    # Loop order: when W is not resident, re-stream whichever operand costs
    # fewer re-read bytes (rows-outer re-reads W nt times, channels-outer
    # re-reads x ct times).  With W resident (ct == 1) the choice is moot.
    if ct == 1 or Cin * Cp * ib * nt <= N * Cin * ib * ct:
        grid2 = (nt, ct)
        x_map2 = lambda n, j: (n, 0)
        w_map2 = lambda n, j: (j, 0)
        s_map2 = lambda n, j: (0, j)
        o_map2 = lambda n, j: (n, j)
    else:
        grid2 = (ct, nt)
        x_map2 = lambda j, n: (n, 0)
        w_map2 = lambda j, n: (j, 0)
        s_map2 = lambda j, n: (0, j)
        o_map2 = lambda j, n: (n, j)

    out = pl.pallas_call(
        _norm_kernel,
        out_shape=jax.ShapeDtypeStruct((N, Cp), out_dtype),
        grid_spec=pltpu.PrefetchScalarGridSpec(
            num_scalar_prefetch=0, grid=grid2,
            in_specs=[pl.BlockSpec((tm, Cin), x_map2),
                      pl.BlockSpec((tn, Cin), w_map2),
                      pl.BlockSpec((1, tn), s_map2),
                      pl.BlockSpec((1, tn), s_map2)],
            out_specs=pl.BlockSpec((tm, tn), o_map2),
        ),
        compiler_params=pltpu.CompilerParams(
            dimension_semantics=("parallel", "parallel"),
            vmem_limit_bytes=vmem_limit),
    )(x2, wmat, scale, shift)

    if Cp != Cout:
        out = out[:, :Cout]
    if len(orig_shape) == 3:
        out = out.reshape(orig_shape[0], orig_shape[1], Cout)
    # TODO(synk): BatchNorm1d running_mean/running_var EMA updates are not
    # produced (the training-mode forward output does not depend on them).
    # TODO(synk): on v7x, split the phase-1 reduction across both TensorCores
    # when ct == 1 (phase 1 currently uses one core; phase 2 already megacores).
    return out


def _reference(x, weight, bias, gamma, beta, eps=1e-5):
    # Pure-JAX reference mirroring the PyTorch module (training-mode BN),
    # bias included — validates that dropping the bias in-kernel is a no-op.
    y = jnp.einsum("...i,oi->...o", x, weight) + bias
    axes = (0, 1) if y.ndim == 3 else (0,)
    mean = jnp.mean(y, axis=axes, keepdims=True)
    var = jnp.mean((y - mean) ** 2, axis=axes, keepdims=True)
    return gamma * (y - mean) / jnp.sqrt(var + eps) + beta


if __name__ == "__main__":
    key = jax.random.PRNGKey(0)
    T, B, Cin, Cout = 8, 2, 32, 64

    k_x, k_w, k_b = jax.random.split(key, 3)
    x = jax.random.normal(k_x, (T, B, Cin), dtype=jnp.float32)

    # Deterministic param init matching the module's __init__:
    #   weight: xavier_uniform with gain('linear') = 1.0
    #   bias:   U(-1/sqrt(fan_in), 1/sqrt(fan_in))  (nn.Linear default)
    #   BN:     gamma = 1, beta = 0
    bound_w = (6.0 / (Cin + Cout)) ** 0.5
    weight = jax.random.uniform(k_w, (Cout, Cin), jnp.float32, -bound_w, bound_w)
    bound_b = 1.0 / (Cin ** 0.5)
    bias = jax.random.uniform(k_b, (Cout,), jnp.float32, -bound_b, bound_b)
    gamma = jnp.ones((Cout,), jnp.float32)
    beta = jnp.zeros((Cout,), jnp.float32)

    out = jax.block_until_ready(linear_bn(x, weight, bias, gamma, beta))
    ref = _reference(x, weight, bias, gamma, beta)

    assert out.shape == (T, B, Cout)
    err = float(jnp.max(jnp.abs(out - ref)))
    assert jnp.allclose(out, ref, atol=1e-4, rtol=1e-4), err
    print("KERNEL_OK")
</pallas_src>

<mosaic_0001>
module attributes {stable_mosaic.version = 11 : i64} {
  func.func @_stats_kernel(%arg0: i32, %arg1: i32, %arg2: memref<16x32xf32, #tpu.memory_space<vmem>>, %arg3: memref<64x32xf32, #tpu.memory_space<vmem>>, %arg4: memref<1x64xf32, #tpu.memory_space<vmem>>, %arg5: memref<1x64xf32, #tpu.memory_space<vmem>>, %arg6: memref<1x64xf32, #tpu.memory_space<vmem>>, %arg7: memref<1x64xf32, #tpu.memory_space<vmem>>) attributes {dimension_semantics = [#tpu.dimension_semantics<arbitrary>, #tpu.dimension_semantics<arbitrary>], iteration_bounds = array<i64: 1, 1>, scalar_prefetch = 0 : i64, scratch_operands = 0 : i64, tpu.core_type = #tpu.core_type<tc>, window_params = [{transform_indices = @transform_0, window_bounds = array<i64: 16, 32>}, {pipeline_mode = #tpu.pipeline_mode<synchronous>, transform_indices = @transform_1, window_bounds = array<i64: 64, 32>}, {pipeline_mode = #tpu.pipeline_mode<synchronous>, transform_indices = @transform_2, window_bounds = array<i64: 1, 64>}, {pipeline_mode = #tpu.pipeline_mode<synchronous>, transform_indices = @transform_3, window_bounds = array<i64: 1, 64>}, {pipeline_mode = #tpu.pipeline_mode<synchronous>, transform_indices = @transform_4, window_bounds = array<i64: 1, 64>}, {pipeline_mode = #tpu.pipeline_mode<synchronous>, transform_indices = @transform_5, window_bounds = array<i64: 1, 64>}]} {
    %c0_i32 = arith.constant 0 : i32
    %0 = arith.cmpi eq, %arg0, %c0_i32 : i32
    %1 = arith.extui %0 : i1 to i32
    %c0_i32_0 = arith.constant 0 : i32
    %2 = arith.cmpi ne, %1, %c0_i32_0 : i32
    scf.if %2 {
      %cst_16 = arith.constant 0.000000e+00 : f32
      %20 = vector.broadcast %cst_16 : f32 to vector<1x64xf32>
      %c0_17 = arith.constant 0 : index
      %c0_18 = arith.constant 0 : index
      %21 = vector.load %arg6[%c0_17, %c0_18] : memref<1x64xf32, #tpu.memory_space<vmem>>, vector<1x64xf32>
      tpu.vector_store %arg6[%c0_17, %c0_18], %20 {strides = array<i32>} : memref<1x64xf32, #tpu.memory_space<vmem>>, vector<1x64xf32>,
      %cst_19 = arith.constant 0.000000e+00 : f32
      %22 = vector.broadcast %cst_19 : f32 to vector<1x64xf32>
      %c0_20 = arith.constant 0 : index
      %c0_21 = arith.constant 0 : index
      %23 = vector.load %arg7[%c0_20, %c0_21] : memref<1x64xf32, #tpu.memory_space<vmem>>, vector<1x64xf32>
      tpu.vector_store %arg7[%c0_20, %c0_21], %22 {strides = array<i32>} : memref<1x64xf32, #tpu.memory_space<vmem>>, vector<1x64xf32>,
    } else {
    }
    %c0 = arith.constant 0 : index
    %c0_1 = arith.constant 0 : index
    %3 = vector.load %arg2[%c0, %c0_1] : memref<16x32xf32, #tpu.memory_space<vmem>>, vector<16x32xf32>
    %c0_2 = arith.constant 0 : index
    %c0_3 = arith.constant 0 : index
    %4 = vector.load %arg3[%c0_2, %c0_3] : memref<64x32xf32, #tpu.memory_space<vmem>>, vector<64x32xf32>
    %cst = arith.constant dense<0.000000e+00> : vector<16x64xf32>
    %5 = tpu.matmul %3, %4, %cst {dimension_numbers = #tpu.dot_dimension_numbers<[1], [1], [0], [0], [0, 0, 1, 0], [], []>} : vector<16x32xf32>, vector<64x32xf32>, vector<16x64xf32> -> vector<16x64xf32>
    %c0_4 = arith.constant 0 : index
    %c0_5 = arith.constant 0 : index
    %6 = vector.load %arg6[%c0_4, %c0_5] : memref<1x64xf32, #tpu.memory_space<vmem>>, vector<1x64xf32>
    %cst_6 = arith.constant dense<0.000000e+00> : vector<64xf32>
    %7 = vector.multi_reduction <add>, %5, %cst_6 [0] : vector<16x64xf32> to vector<64xf32>
    %8 = vector.shape_cast %7 : vector<64xf32> to vector<1x64xf32>
    %9 = arith.addf %6, %8 : vector<1x64xf32>
    %c0_7 = arith.constant 0 : index
    %c0_8 = arith.constant 0 : index
    %10 = vector.load %arg6[%c0_7, %c0_8] : memref<1x64xf32, #tpu.memory_space<vmem>>, vector<1x64xf32>
    tpu.vector_store %arg6[%c0_7, %c0_8], %9 {strides = array<i32>} : memref<1x64xf32, #tpu.memory_space<vmem>>, vector<1x64xf32>,
    %c0_9 = arith.constant 0 : index
    %c0_10 = arith.constant 0 : index
    %11 = vector.load %arg7[%c0_9, %c0_10] : memref<1x64xf32, #tpu.memory_space<vmem>>, vector<1x64xf32>
    %12 = arith.mulf %5, %5 : vector<16x64xf32>
    %cst_11 = arith.constant dense<0.000000e+00> : vector<64xf32>
    %13 = vector.multi_reduction <add>, %12, %cst_11 [0] : vector<16x64xf32> to vector<64xf32>
    %14 = vector.shape_cast %13 : vector<64xf32> to vector<1x64xf32>
    %15 = arith.addf %11, %14 : vector<1x64xf32>
    %c0_12 = arith.constant 0 : index
    %c0_13 = arith.constant 0 : index
    %16 = vector.load %arg7[%c0_12, %c0_13] : memref<1x64xf32, #tpu.memory_space<vmem>>, vector<1x64xf32>
    tpu.vector_store %arg7[%c0_12, %c0_13], %15 {strides = array<i32>} : memref<1x64xf32, #tpu.memory_space<vmem>>, vector<1x64xf32>,
    %c0_i32_14 = arith.constant 0 : i32
    %17 = arith.cmpi eq, %arg0, %c0_i32_14 : i32
    %18 = arith.extui %17 : i1 to i32
    %c0_i32_15 = arith.constant 0 : i32
    %19 = arith.cmpi ne, %18, %c0_i32_15 : i32
    scf.if %19 {
      %c0_16 = arith.constant 0 : index
      %c0_17 = arith.constant 0 : index
      %20 = vector.load %arg6[%c0_16, %c0_17] : memref<1x64xf32, #tpu.memory_space<vmem>>, vector<1x64xf32>
      %cst_18 = arith.constant 6.250000e-02 : f32
      %21 = vector.broadcast %cst_18 : f32 to vector<1x64xf32>
      %22 = arith.mulf %20, %21 : vector<1x64xf32>
      %c0_19 = arith.constant 0 : index
      %c0_20 = arith.constant 0 : index
      %23 = vector.load %arg7[%c0_19, %c0_20] : memref<1x64xf32, #tpu.memory_space<vmem>>, vector<1x64xf32>
      %cst_21 = arith.constant 6.250000e-02 : f32
      %24 = vector.broadcast %cst_21 : f32 to vector<1x64xf32>
      %25 = arith.mulf %23, %24 : vector<1x64xf32>
      %26 = arith.mulf %22, %22 : vector<1x64xf32>
      %27 = arith.subf %25, %26 : vector<1x64xf32>
      %cst_22 = arith.constant 0.000000e+00 : f32
      %28 = vector.broadcast %cst_22 : f32 to vector<1x64xf32>
      %29 = arith.maximumf %27, %28 : vector<1x64xf32>
      %cst_23 = arith.constant 9.99999974E-6 : f32
      %30 = vector.broadcast %cst_23 : f32 to vector<1x64xf32>
      %31 = arith.addf %29, %30 : vector<1x64xf32>
      %32 = math.rsqrt %31 : vector<1x64xf32>
      %c0_24 = arith.constant 0 : index
      %c0_25 = arith.constant 0 : index
      %33 = vector.load %arg4[%c0_24, %c0_25] : memref<1x64xf32, #tpu.memory_space<vmem>>, vector<1x64xf32>
      %34 = arith.mulf %33, %32 : vector<1x64xf32>
      %c0_26 = arith.constant 0 : index
      %c0_27 = arith.constant 0 : index
      %35 = vector.load %arg6[%c0_26, %c0_27] : memref<1x64xf32, #tpu.memory_space<vmem>>, vector<1x64xf32>
      tpu.vector_store %arg6[%c0_26, %c0_27], %34 {strides = array<i32>} : memref<1x64xf32, #tpu.memory_space<vmem>>, vector<1x64xf32>,
      %c0_28 = arith.constant 0 : index
      %c0_29 = arith.constant 0 : index
      %36 = vector.load %arg5[%c0_28, %c0_29] : memref<1x64xf32, #tpu.memory_space<vmem>>, vector<1x64xf32>
      %37 = arith.mulf %22, %34 : vector<1x64xf32>
      %38 = arith.subf %36, %37 : vector<1x64xf32>
      %c0_30 = arith.constant 0 : index
      %c0_31 = arith.constant 0 : index
      %39 = vector.load %arg7[%c0_30, %c0_31] : memref<1x64xf32, #tpu.memory_space<vmem>>, vector<1x64xf32>
      tpu.vector_store %arg7[%c0_30, %c0_31], %38 {strides = array<i32>} : memref<1x64xf32, #tpu.memory_space<vmem>>, vector<1x64xf32>,
    } else {
    }
    return
  }
  func.func @transform_0(%arg0: i32, %arg1: i32) -> (i32, i32) {
    %c0_i32 = arith.constant 0 : i32
    %c0_i32_0 = arith.constant 0 : i32
    return %arg0, %c0_i32 : i32, i32
  }
  func.func @transform_1(%arg0: i32, %arg1: i32) -> (i32, i32) {
    %c0_i32 = arith.constant 0 : i32
    %c0_i32_0 = arith.constant 0 : i32
    %c0_i32_1 = arith.constant 0 : i32
    return %c0_i32, %c0_i32_0 : i32, i32
  }
  func.func @transform_2(%arg0: i32, %arg1: i32) -> (i32, i32) {
    %c0_i32 = arith.constant 0 : i32
    %c0_i32_0 = arith.constant 0 : i32
    %c0_i32_1 = arith.constant 0 : i32
    return %c0_i32, %c0_i32_0 : i32, i32
  }
  func.func @transform_3(%arg0: i32, %arg1: i32) -> (i32, i32) {
    %c0_i32 = arith.constant 0 : i32
    %c0_i32_0 = arith.constant 0 : i32
    %c0_i32_1 = arith.constant 0 : i32
    return %c0_i32, %c0_i32_0 : i32, i32
  }
  func.func @transform_4(%arg0: i32, %arg1: i32) -> (i32, i32) {
    %c0_i32 = arith.constant 0 : i32
    %c0_i32_0 = arith.constant 0 : i32
    %c0_i32_1 = arith.constant 0 : i32
    return %c0_i32, %c0_i32_0 : i32, i32
  }
  func.func @transform_5(%arg0: i32, %arg1: i32) -> (i32, i32) {
    %c0_i32 = arith.constant 0 : i32
    %c0_i32_0 = arith.constant 0 : i32
    %c0_i32_1 = arith.constant 0 : i32
    return %c0_i32, %c0_i32_0 : i32, i32
  }
}

</mosaic_0001>

<bundles_post_ra>
// kernel: tpu_custom_call.1
= control target key start
LH: loop header
LB: loop body
LE: loop exit
PB: predicated region body
PF: predicated region fallthrough
CT: control target
= control target key end

     0   :  { %11 = vsyncpa [#allocation3], 0  ;;  %vm38_vm0 = vcmask 261120   ;;  %s458_s0 = inlined_call_operand.vmem [shape: f32[16,32], index: 0, kind: input, shape index: {}]   ;;  %s459_s1 = inlined_call_operand.vmem [shape: f32[64,32], index: 1, kind: input, shape index: {}]   ;;  %s460_s2 = inlined_call_operand.vmem [shape: f32[1,64], index: 2, kind: input, shape index: {}]   ;;  %s461_s3 = inlined_call_operand.vmem [shape: f32[1,64], index: 3, kind: input, shape index: {}]   ;;  %s462_s4 = inlined_call_operand.hbm [shape: f32[1,64], index: 4, kind: output, shape index: {0}]   ;;  %s463_s5 = inlined_call_operand.hbm [shape: f32[1,64], index: 5, kind: output, shape index: {1}]  }
   0x1   :  { %v30_v0 = vld [vmem:[%s459_s1] sm:$0xff]  ;;  %v31_v1 = vld [vmem:[%s459_s1 + $0x8] sm:$0xff]  ;;  %v32_v2 = vld [vmem:[%s459_s1 + $0x10] sm:$0xff] }
   0x2   :  { %v258_v3 = vpack.c.bf16 %v31_v1, %v30_v0  ;;  %vm379_vm1 = vmpackc.low %vm38_vm0, %vm38_vm0  ;;  %v33_v5 = vld [vmem:[%s459_s1 + $0x18] sm:$0xff]  ;;  %v28_v7 = vld [vmem:[%s458_s0] sm:$0xff] }
   0x3   :  { %v264_v6 = vpack.c.bf16 %v33_v5, %v32_v2 }
   0x4   :  { %260 = vmatprep.subr.msk.bf16.mxu0 %vm379_vm1, %v258_v3 }
   0x5   :  { %12 = vsyncpa [#allocation5], 0  ;;  %263 = vmatpush3.bf16.xpose.msk.msra.mxu0 %vm379_vm1, %v258_v3  ;;  %255 = vmatprep.mubr.msk.f32.mxu0 %vm38_vm0, %v28_v7  ;;  %v34_v8 = vld [vmem:[%s459_s1 + $0x20] sm:$0xff]  ;;  %v35_v9 = vld [vmem:[%s459_s1 + $0x28] sm:$0xff]  ;;  %vm25_vm2 = vcmask 516096   ;;  %v335_v15 = vmov 0.0  }
   0x6   :  { %266 = vmatprep.subr.msk.bf16.mxu0 %vm379_vm1, %v264_v6  ;;  %v270_v10 = vpack.c.bf16 %v35_v9, %v34_v8  ;;  %v36_v11 = vld [vmem:[%s459_s1 + $0x30] sm:$0xff]  ;;  %v37_v12 = vld [vmem:[%s459_s1 + $0x38] sm:$0xff]  ;;  %v29_v14 = vld [vmem:[%s458_s0 + $0x8] sm:$0xff]  ;;  %26 = vst.msk [vmem:[#allocation2] sm:$0x1] %vm25_vm2, %v335_v15  ;;  %vm145_vm3 = vcmask 523264  }
   0x7   :  { %v276_v13 = vpack.c.bf16 %v37_v12, %v36_v11  ;;  %27 = vst.msk [vmem:[#allocation4] sm:$0x1] %vm25_vm2, %v335_v15  ;;  %v184_v50 = vld [vmem:[%s460_s2] sm:$0x1]  ;;  %s336_s13 = smov [#allocation2]   ;;  %s337_s17 = smov [#allocation4]  }
   0x8   :  { %s197_s14 = sshll.u32 %s336_s13, 4  ;;  %v187_v53 = vld [vmem:[%s461_s3] sm:$0x1]  ;;  %s207_s18 = sshll.u32 %s337_s17, 4  ;;  %s198_s14 = int_to_ptr.vmem [resolvable:$true] %s197_s14  ;;  %s208_s18 = int_to_ptr.vmem [resolvable:$true] %s207_s18 }
   0x9   :  { %s287_s19 = scalar_lea.vmem %s198_s14, 16  ;;  %s291_s20 = scalar_lea.vmem %s198_s14, 32 }
   0xa   :  { %p288_p0 = scmp.ne.s32.totalorder %s198_s14, %s287_s19  ;;  %p292_p1 = scmp.lt.s32.totalorder %s198_s14, %s198_s14 }
   0xb   :  { %p293_p2 = scmp.lt.s32.totalorder %s291_s20, %s287_s19 }
   0xd   :  { %269 = vmatpush3.bf16.xpose.msk.msra.mxu0 %vm379_vm1, %v264_v6  ;;  %v144_v35 = vld [vmem:[#allocation2] sm:$0x1]  ;;  %p294_p3 = por %p293_p2, %p292_p1 }
   0xe   :  { %272 = vmatprep.subr.msk.bf16.mxu0 %vm379_vm1, %v270_v10  ;;  %v158_v38 = vld [vmem:[#allocation4] sm:$0x1] }
   0xf   :  { %p295_p4 = pnand %p294_p3, %p288_p0 }
  0x15   :  { %275 = vmatpush3.bf16.xpose.msk.msra.mxu0 %vm379_vm1, %v270_v10 }
  0x16   :  { %278 = vmatprep.subr.msk.bf16.mxu0 %vm379_vm1, %v276_v13 }
  0x1d   :  { %281 = vmatpush3.bf16.xpose.msk.msra.mxu0 %vm379_vm1, %v276_v13 }
  0x24   :  { %256 = vmatmul.mubr.msk.f32.vlgmr.msra.gmra.mrb[0].mxu0 %vm38_vm0, %v29_v14 }
  0xf7   :  { %v257_v16 = vpop.f32.mrb[0].mxu0 }
  0xf8   :  { %v147_v17 = vsel %vm145_vm3, %v257_v16, 0.0  ;;  %v160_v18 = vmul.f32 %v257_v16, %v257_v16  ;;  %v135_v19 = vpop.f32.mrb[1].mxu0 }
  0xf9   :  { %v146_v20 = vsel %vm145_vm3, %v135_v19, 0.0  ;;  %v159_v21 = vmul.f32 %v135_v19, %v135_v19 }
  0xfa   :  { %v162_v22 = vsel %vm145_vm3, %v160_v18, 0.0  ;;  %v148_v23 = vadd.f32 %v147_v17, %v146_v20 }
  0xfb   :  { %v161_v24 = vsel %vm145_vm3, %v159_v21, 0.0 }
  0xfc   :  { %v149_v25 = vrot.slane %v148_v23, 4  ;;  %v163_v26 = vadd.f32 %v162_v22, %v161_v24 }
  0xfe   :  { %v150_v27 = vadd.f32 %v149_v25, %v148_v23  ;;  %v164_v28 = vrot.slane %v163_v26, 4 }
 0x100   :  { %v151_v29 = vrot.slane %v150_v27, 2  ;;  %v165_v30 = vadd.f32 %v164_v28, %v163_v26 }
 0x102   :  { %v152_v31 = vadd.f32 %v151_v29, %v150_v27  ;;  %v166_v32 = vrot.slane %v165_v30, 2 }
 0x104   :  { %v153_v33 = vrot.slane %v152_v31, 1  ;;  %v167_v34 = vadd.f32 %v166_v32, %v165_v30 }
 0x106   :  { %v154_v36 = vadd.f32 %v153_v33, %v152_v31  ;;  %v168_v37 = vrot.slane %v167_v34, 1 }
 0x108   :  { %v169_v39 = vadd.f32 %v168_v37, %v167_v34  ;;  %v155_v40 = vadd.f32 %v154_v36, %v144_v35 }
 0x10a   :  { %157 = vst.msk [vmem:[#allocation2] sm:$0x1] %vm25_vm2, %v155_v40  ;;  %v170_v41 = vadd.f32 %v169_v39, %v158_v38 }
 0x10c   :  { %171 = vst.msk [vmem:[#allocation4] sm:$0x1] %vm25_vm2, %v170_v41 }
 0x111   :  { %v175_v42 = vld [vmem:[#allocation2] sm:$0x1] }
 0x112   :  { %v176_v43 = vmul.f32 0.0625, %v175_v42 }
 0x113   :  { %v177_v44 = vld [vmem:[#allocation4] sm:$0x1] }
 0x114   :  { %v178_v45 = vmul.f32 0.0625, %v177_v44  ;;  %v179_v46 = vmul.f32 %v176_v43, %v176_v43 }
 0x116   :  { %v180_v47 = vsub.f32 %v178_v45, %v179_v46 }
 0x118   :  { %v181_v48 = vmax.f32 %v180_v47, 0.0 }
 0x11a   :  { %v182_v49 = vadd.f32 1e-05, %v181_v48 }
 0x11c   :  { %285 = vrsqrt.f32 %v182_v49 }
 0x126   :  { %v286_v51 = vpop.eup %285 }
 0x127   :  { %v185_v52 = vmul.f32 %v286_v51, %v184_v50 }
 0x129   :  { %186 = vst.msk [vmem:[#allocation2] sm:$0x1] %vm25_vm2, %v185_v52  ;;  %v188_v54 = vmul.f32 %v185_v52, %v176_v43 }
 0x12a   :  { %298 = shalt.err (!%p295_p4)
}
 0x12b   :  { %s299_s22 = scalar_lea.hbm %s462_s4, 16 }
 0x12c   :  { %p300_p5 = scmp.ne.s32.totalorder %s462_s4, %s299_s22  ;;  %p303_p6 = scmp.lt.u32.totalorder %s299_s22, %s462_s4 }
 0x12e   :  { %p305_p7 = pnand %p303_p6, %p300_p5 }
 0x130   :  { %308 = shalt.err (!%p305_p7)
}
 0x131   :  { %200 = dma.vmem_to_hbm [thread:$0]  %s198_s14, 16, %s462_s4, [#allocation3]   ;;  %v189_v55 = vsub.f32 %v187_v53, %v188_v54 }
 0x132   :  { %s309_s28 = scalar_lea.vmem %s208_s18, 16  ;;  %s313_s29 = scalar_lea.vmem %s208_s18, 32 }
 0x133   :  { %190 = vst.msk [vmem:[#allocation4] sm:$0x1] %vm25_vm2, %v189_v55  ;;  %p310_p8 = scmp.ne.s32.totalorder %s208_s18, %s309_s28  ;;  %p314_p9 = scmp.lt.s32.totalorder %s208_s18, %s208_s18 }
 0x134   :  { %p315_p10 = scmp.lt.s32.totalorder %s313_s29, %s309_s28 }
 0x136   :  { %p316_p11 = por %p315_p10, %p314_p9 }
 0x138   :  { %p317_p12 = pnand %p316_p11, %p310_p8 }
 0x13a   :  { %320 = shalt.err (!%p317_p12)
}
 0x13b   :  { %s321_s7 = scalar_lea.hbm %s463_s5, 16 }
 0x13c   :  { %p322_p13 = scmp.ne.s32.totalorder %s463_s5, %s321_s7  ;;  %p325_p0 = scmp.lt.u32.totalorder %s321_s7, %s463_s5 }
 0x13e   :  { %p327_p1 = pnand %p325_p0, %p322_p13 }
 0x140   :  { %330 = shalt.err (!%p327_p1)
}
 0x141   :  { %210 = dma.vmem_to_hbm [thread:$0]  %s208_s18, 16, %s463_s5, [#allocation5]  }
 0x142   :  { %331 = dma.done.wait [#allocation3], 16  }
 0x143   :  { %332 = vsyncadd [#allocation3], 4294967280 }
 0x144   :  { %333 = dma.done.wait [#allocation5], 16  }
 0x145   :  { %334 = vsyncadd [#allocation5], 4294967280 }
 0x146   :  { %217 = vsyncpa [#allocation3], 1 }
 0x147   :  { %218 = vsyncpa [#allocation5], 1 }

</bundles_post_ra>
